<compile_context>
chip_gen: v7x
topology: tpu7x:2x2x1
jax: 0.10.0
libtpu: 0.0.40
codegen_flags: <defaults>
</compile_context>

<pallas_src>
import jax
import jax.numpy as jnp
from jax import lax
from jax.experimental import pallas as pl
from jax.experimental.pallas import tpu as pltpu

EPS = 1e-6


def _round_up(x, m):
    return ((x + m - 1) // m) * m


def _round_down(x, m):
    return (x // m) * m


def _layernorm_epilogue(y, d_model, d_padded, gamma, beta, eps):
    """LayerNorm with torch.std semantics on a (rows, d_padded) f32 tile.

    Relies on padded output lanes of `y` being exactly zero (weight output rows
    and bias are zero-padded), so no iota/where masking is needed.
    """
    mean = jnp.sum(y, axis=-1, keepdims=True) * (1.0 / d_model)
    centered = y - mean
    ssq = jnp.sum(centered * centered, axis=-1, keepdims=True)
    if d_padded != d_model:
        # Padded lanes of `centered` equal -mean; remove their contribution.
        ssq = ssq - float(d_padded - d_model) * (mean * mean)
    std = jnp.sqrt(ssq * (1.0 / max(d_model - 1, 1)))
    t = std + eps
    inv = pl.reciprocal(t, approx=True)          # EUP slot, (rows, 1) column
    inv = inv * (2.0 - t * inv)                  # one Newton step is plenty
    return gamma * centered * inv + beta


def _make_kernel(d_model, d_padded, eps, precision):
    """Resident-weight path: single row-tile grid axis."""

    def kernel(x_ref, w_ref, p_ref, o_ref):
        # x_ref: (TR, D)   w_ref: (d_p, D) torch layout (out, in)
        # p_ref: (3, d_p) f32 packed [bias; gamma; beta]   o_ref: (TR, d_p)
        y = lax.dot_general(
            x_ref[...], w_ref[...],
            dimension_numbers=(((1,), (1,)), ((), ())),   # x @ W^T, no transpose
            preferred_element_type=jnp.float32,
            precision=precision,
        )
        y = y + p_ref[0:1, :]
        # TODO(synk): nn.Dropout training-mode random masking not implemented
        # (identity / eval semantics here).
        out = _layernorm_epilogue(y, d_model, d_padded, p_ref[1:2, :],
                                  p_ref[2:3, :], eps)
        o_ref[...] = out.astype(o_ref.dtype)

    return kernel


def _make_ktiled_kernel(d_model, d_padded, eps, precision):
    """K-tiled path: (row_tile, k) grid with an f32 VMEM accumulator."""

    def kernel(x_ref, w_ref, p_ref, o_ref, acc_ref):
        k = pl.program_id(1)

        @pl.when(k == 0)
        def _():
            acc_ref[...] = jnp.zeros_like(acc_ref)

        acc_ref[...] += lax.dot_general(
            x_ref[...], w_ref[...],
            dimension_numbers=(((1,), (1,)), ((), ())),
            preferred_element_type=jnp.float32,
            precision=precision,
        )

        @pl.when(k == pl.num_programs(1) - 1)
        def _():
            y = acc_ref[...] + p_ref[0:1, :]
            out = _layernorm_epilogue(y, d_model, d_padded, p_ref[1:2, :],
                                      p_ref[2:3, :], eps)
            o_ref[...] = out.astype(o_ref.dtype)

    return kernel


def nonresidual_block(x, weight, bias, gamma, beta, *, eps=EPS,
                      compute_dtype=None, k_tile=None, precision=None):
    """NonresidualBlock forward: LayerNorm(Dropout(Linear(x))).

    x: (B, S, D); weight: torch-layout (D_out=D, D_in=D); bias/gamma/beta: (D,).
    compute_dtype: optional cast (e.g. jnp.bfloat16) for the matmul operands.
    k_tile: force the K-tiled path with this K tile (mostly for testing / huge D).
    """
    B, S, D = x.shape
    rows = B * S
    out_dtype = x.dtype

    if compute_dtype is not None:
        x = x.astype(compute_dtype)
        weight = weight.astype(compute_dtype)

    x_isz = jnp.dtype(x.dtype).itemsize
    w_isz = jnp.dtype(weight.dtype).itemsize
    o_isz = jnp.dtype(out_dtype).itemsize
    row_align = 16 if x.dtype == jnp.bfloat16 else 8

    d_p = _round_up(D, 128)                 # lane-dense output dim (unmasked vst)

    # Generation-aware VMEM budget (64 MiB/TC on v7x, 128 MiB on v5e/v6e).
    try:
        vmem_cap = int(pltpu.get_tpu_info().vmem_capacity_bytes)
    except Exception:
        vmem_cap = 64 << 20                 # conservative fallback (v7x per-TC)
    budget = int(vmem_cap * 0.85)

    x2 = x.reshape(rows, D)                 # free: contiguous reshape

    # Pack bias / gamma / beta into one f32 operand (single DMA + buffer).
    params = jnp.stack([bias, gamma, beta]).astype(jnp.float32)
    if d_p != D:
        params = jnp.pad(params, ((0, 0), (0, d_p - D)))

    resident_w_bytes = d_p * D * w_isz      # single-buffered resident weight
    use_k_tiling = (k_tile is not None) or (resident_w_bytes > 0.4 * budget)

    invariant = pl.Buffered(1)              # grid-invariant operands: 1 buffer

    if not use_k_tiling:
        # ---- Path 1: weight resident in VMEM, single row-tile grid axis ----
        # Pad only the weight's output dim; x stays unpadded (full-extent K).
        w2 = weight if d_p == D else jnp.pad(weight, ((0, d_p - D), (0, 0)))

        fixed = resident_w_bytes + 3 * d_p * 4
        per_row = (2 * D * x_isz            # x tiles (double-buffered)
                   + 2 * d_p * o_isz        # out tiles (double-buffered)
                   + 4 * d_p * 4)           # live f32 temporaries (y/centered/out)
        tr = (budget - fixed) // max(per_row, 1)
        tr = min(tr, 1024, _round_up(pl.cdiv(rows, 2), row_align))
        tile_rows = max(row_align, _round_down(tr, row_align))

        grid = (pl.cdiv(rows, tile_rows),)
        in_specs = [
            pl.BlockSpec((tile_rows, D), lambda i: (i, 0)),
            pl.BlockSpec((d_p, D), lambda i: (0, 0), pipeline_mode=invariant),
            pl.BlockSpec((3, d_p), lambda i: (0, 0), pipeline_mode=invariant),
        ]
        out_specs = pl.BlockSpec((tile_rows, d_p), lambda i: (i, 0))
        scratch_shapes = []
        dims = ("parallel",)
        kernel = _make_kernel(D, d_p, eps, precision)
        vmem_need = fixed + tile_rows * per_row
        w_bytes = w2.size * w_isz

    else:
        # ---- Path 2: K-tiled reduction grid with an f32 VMEM accumulator ----
        d_k = _round_up(D, 128)
        tk = None
        for cand in (k_tile, 512, 256, 128):
            if cand is not None and cand % 128 == 0 and 0 < cand <= d_k and d_k % cand == 0:
                tk = cand
                break
        if tk is None:
            tk = min(128, d_k)
        nk = d_k // tk

        if d_k != D:
            x2 = jnp.pad(x2, ((0, 0), (0, d_k - D)))      # zero K-pad: no effect on y
        w2 = weight
        if (d_p, d_k) != (D, D):
            w2 = jnp.pad(weight, ((0, d_p - D), (0, d_k - D)))

        fixed = 2 * d_p * tk * w_isz + 3 * d_p * 4
        per_row = (2 * tk * x_isz           # x K-slices (double-buffered)
                   + 2 * d_p * o_isz        # out tiles (double-buffered)
                   + d_p * 4                # f32 accumulator
                   + 3 * d_p * 4)           # epilogue f32 temporaries
        tr = (budget - fixed) // max(per_row, 1)
        tr = min(tr, 1024, _round_up(pl.cdiv(rows, 2), row_align))
        tile_rows = max(row_align, _round_down(tr, row_align))

        grid = (pl.cdiv(rows, tile_rows), nk)
        in_specs = [
            pl.BlockSpec((tile_rows, tk), lambda i, k: (i, k)),
            pl.BlockSpec((d_p, tk), lambda i, k: (0, k)),
            pl.BlockSpec((3, d_p), lambda i, k: (0, 0), pipeline_mode=invariant),
        ]
        out_specs = pl.BlockSpec((tile_rows, d_p), lambda i, k: (i, 0))
        scratch_shapes = [pltpu.VMEM((tile_rows, d_p), jnp.float32)]
        dims = ("parallel", "arbitrary")
        kernel = _make_ktiled_kernel(D, d_p, eps, precision)
        vmem_need = fixed + tile_rows * per_row
        w_bytes = w2.size * w_isz

    vmem_limit = int(min(max(vmem_need + (4 << 20), 32 << 20),
                         int(vmem_cap * 0.9)))

    cost = pl.CostEstimate(
        flops=2 * rows * D * d_p,
        transcendentals=2 * rows,                         # sqrt + reciprocal / row
        bytes_accessed=(rows * D * x_isz + w_bytes + params.size * 4
                        + rows * d_p * o_isz),
    )

    out = pl.pallas_call(
        kernel,
        out_shape=jax.ShapeDtypeStruct((rows, d_p), out_dtype),
        grid_spec=pltpu.PrefetchScalarGridSpec(
            num_scalar_prefetch=0,
            grid=grid,
            in_specs=in_specs,
            out_specs=out_specs,
            scratch_shapes=scratch_shapes,
        ),
        compiler_params=pltpu.CompilerParams(
            dimension_semantics=dims,
            vmem_limit_bytes=vmem_limit,
        ),
        cost_estimate=cost,
    )(x2, w2, params)

    if d_p != D:
        out = out[:, :D]
    return out.reshape(B, S, D)


def _reference(x, weight, bias, gamma, beta, eps=EPS):
    y = jnp.einsum("bsd,od->bso", x, weight) + bias
    mean = jnp.mean(y, axis=-1, keepdims=True)
    c = y - mean
    var = jnp.sum(c * c, axis=-1, keepdims=True) / (y.shape[-1] - 1)
    std = jnp.sqrt(var)
    return gamma * c / (std + eps) + beta


if __name__ == "__main__":
    key = jax.random.PRNGKey(0)
    kx, kw, kb, kx2, kw2, kb2, kg2 = jax.random.split(key, 7)

    # Case 1: small d_model (32 -> padded to 128 output lanes), resident-weight path.
    B, S, D = 2, 8, 32
    x = jax.random.normal(kx, (B, S, D), dtype=jnp.float32)
    weight = jax.random.normal(kw, (D, D), dtype=jnp.float32) * (1.0 / jnp.sqrt(D))
    bias = jax.random.normal(kb, (D,), dtype=jnp.float32) * 0.01
    gamma = jnp.ones((D,), dtype=jnp.float32)
    beta = jnp.zeros((D,), dtype=jnp.float32)

    out = jax.block_until_ready(nonresidual_block(x, weight, bias, gamma, beta))
    ref = _reference(x, weight, bias, gamma, beta)
    assert out.shape == (B, S, D)
    assert jnp.allclose(out, ref, atol=2e-4, rtol=2e-4), "mismatch vs reference (path 1)"

    # Case 2: lane-aligned d_model, force the K-tiled reduction-grid path (2 K steps).
    B2, S2, D2 = 2, 8, 256
    x_b = jax.random.normal(kx2, (B2, S2, D2), dtype=jnp.float32)
    w_b = jax.random.normal(kw2, (D2, D2), dtype=jnp.float32) * (1.0 / jnp.sqrt(D2))
    b_b = jax.random.normal(kb2, (D2,), dtype=jnp.float32) * 0.01
    g_b = 1.0 + 0.1 * jax.random.normal(kg2, (D2,), dtype=jnp.float32)
    be_b = jnp.zeros((D2,), dtype=jnp.float32)

    out2 = jax.block_until_ready(
        nonresidual_block(x_b, w_b, b_b, g_b, be_b, k_tile=128))
    ref2 = _reference(x_b, w_b, b_b, g_b, be_b)
    assert out2.shape == (B2, S2, D2)
    assert jnp.allclose(out2, ref2, atol=5e-4, rtol=5e-4), "mismatch vs reference (path 2)"

    print("KERNEL_OK")
</pallas_src>

<mosaic_0001>
module attributes {stable_mosaic.version = 11 : i64} {
  func.func @kernel(%arg0: i32, %arg1: memref<8x32xf32, #tpu.memory_space<vmem>>, %arg2: memref<128x32xf32, #tpu.memory_space<vmem>>, %arg3: memref<3x128xf32, #tpu.memory_space<vmem>>, %arg4: memref<8x128xf32, #tpu.memory_space<vmem>>) attributes {dimension_semantics = [#tpu.dimension_semantics<parallel>], iteration_bounds = array<i64: 2>, scalar_prefetch = 0 : i64, scratch_operands = 0 : i64, tpu.core_type = #tpu.core_type<tc>, window_params = [{transform_indices = @transform_0, window_bounds = array<i64: 8, 32>}, {pipeline_mode = #tpu.pipeline_mode<synchronous>, transform_indices = @transform_1, window_bounds = array<i64: 128, 32>}, {pipeline_mode = #tpu.pipeline_mode<synchronous>, transform_indices = @transform_2, window_bounds = array<i64: 3, 128>}, {transform_indices = @transform_3, window_bounds = array<i64: 8, 128>}]} {
    %c0 = arith.constant 0 : index
    %c0_0 = arith.constant 0 : index
    %0 = vector.load %arg1[%c0, %c0_0] : memref<8x32xf32, #tpu.memory_space<vmem>>, vector<8x32xf32>
    %c0_1 = arith.constant 0 : index
    %c0_2 = arith.constant 0 : index
    %1 = vector.load %arg2[%c0_1, %c0_2] : memref<128x32xf32, #tpu.memory_space<vmem>>, vector<128x32xf32>
    %cst = arith.constant dense<0.000000e+00> : vector<8x128xf32>
    %2 = tpu.matmul %0, %1, %cst {dimension_numbers = #tpu.dot_dimension_numbers<[1], [1], [0], [0], [0, 0, 1, 0], [], []>} : vector<8x32xf32>, vector<128x32xf32>, vector<8x128xf32> -> vector<8x128xf32>
    %c0_3 = arith.constant 0 : index
    %c0_4 = arith.constant 0 : index
    %3 = vector.load %arg3[%c0_3, %c0_4] : memref<3x128xf32, #tpu.memory_space<vmem>>, vector<1x128xf32>
    %4 = vector.broadcast %3 : vector<1x128xf32> to vector<8x128xf32>
    %5 = arith.addf %2, %4 : vector<8x128xf32>
    %c1 = arith.constant 1 : index
    %c0_5 = arith.constant 0 : index
    %6 = vector.load %arg3[%c1, %c0_5] : memref<3x128xf32, #tpu.memory_space<vmem>>, vector<1x128xf32>
    %c2 = arith.constant 2 : index
    %c0_6 = arith.constant 0 : index
    %7 = vector.load %arg3[%c2, %c0_6] : memref<3x128xf32, #tpu.memory_space<vmem>>, vector<1x128xf32>
    %cst_7 = arith.constant dense<0.000000e+00> : vector<8xf32>
    %8 = vector.multi_reduction <add>, %5, %cst_7 [1] : vector<8x128xf32> to vector<8xf32>
    %9 = vector.shape_cast %8 : vector<8xf32> to vector<8x1xf32>
    %cst_8 = arith.constant 3.125000e-02 : f32
    %10 = vector.broadcast %cst_8 : f32 to vector<8x1xf32>
    %11 = arith.mulf %9, %10 : vector<8x1xf32>
    %12 = vector.broadcast %11 : vector<8x1xf32> to vector<8x128xf32>
    %13 = arith.subf %5, %12 : vector<8x128xf32>
    %14 = arith.mulf %13, %13 : vector<8x128xf32>
    %cst_9 = arith.constant dense<0.000000e+00> : vector<8xf32>
    %15 = vector.multi_reduction <add>, %14, %cst_9 [1] : vector<8x128xf32> to vector<8xf32>
    %16 = vector.shape_cast %15 : vector<8xf32> to vector<8x1xf32>
    %17 = arith.mulf %11, %11 : vector<8x1xf32>
    %cst_10 = arith.constant 9.600000e+01 : f32
    %18 = vector.broadcast %cst_10 : f32 to vector<8x1xf32>
    %19 = arith.mulf %18, %17 : vector<8x1xf32>
    %20 = arith.subf %16, %19 : vector<8x1xf32>
    %cst_11 = arith.constant 0.0322580636 : f32
    %21 = vector.broadcast %cst_11 : f32 to vector<8x1xf32>
    %22 = arith.mulf %20, %21 : vector<8x1xf32>
    %23 = math.sqrt %22 : vector<8x1xf32>
    %cst_12 = arith.constant 9.99999997E-7 : f32
    %24 = vector.broadcast %cst_12 : f32 to vector<8x1xf32>
    %25 = arith.addf %23, %24 : vector<8x1xf32>
    %26 = tpu.reciprocal %25 {approx = true} : vector<8x1xf32> -> vector<8x1xf32>
    %27 = arith.mulf %25, %26 : vector<8x1xf32>
    %cst_13 = arith.constant 2.000000e+00 : f32
    %28 = vector.broadcast %cst_13 : f32 to vector<8x1xf32>
    %29 = arith.subf %28, %27 : vector<8x1xf32>
    %30 = arith.mulf %26, %29 : vector<8x1xf32>
    %31 = vector.broadcast %6 : vector<1x128xf32> to vector<8x128xf32>
    %32 = arith.mulf %31, %13 : vector<8x128xf32>
    %33 = vector.broadcast %30 : vector<8x1xf32> to vector<8x128xf32>
    %34 = arith.mulf %32, %33 : vector<8x128xf32>
    %35 = vector.broadcast %7 : vector<1x128xf32> to vector<8x128xf32>
    %36 = arith.addf %34, %35 : vector<8x128xf32>
    %c0_14 = arith.constant 0 : index
    %c0_15 = arith.constant 0 : index
    %37 = vector.load %arg4[%c0_14, %c0_15] : memref<8x128xf32, #tpu.memory_space<vmem>>, vector<8x128xf32>
    tpu.vector_store %arg4[%c0_14, %c0_15], %36 {strides = array<i32>} : memref<8x128xf32, #tpu.memory_space<vmem>>, vector<8x128xf32>,
    return
  }
  func.func @transform_0(%arg0: i32) -> (i32, i32) {
    %c0_i32 = arith.constant 0 : i32
    %c0_i32_0 = arith.constant 0 : i32
    return %arg0, %c0_i32 : i32, i32
  }
  func.func @transform_1(%arg0: i32) -> (i32, i32) {
    %c0_i32 = arith.constant 0 : i32
    %c0_i32_0 = arith.constant 0 : i32
    %c0_i32_1 = arith.constant 0 : i32
    return %c0_i32, %c0_i32_0 : i32, i32
  }
  func.func @transform_2(%arg0: i32) -> (i32, i32) {
    %c0_i32 = arith.constant 0 : i32
    %c0_i32_0 = arith.constant 0 : i32
    %c0_i32_1 = arith.constant 0 : i32
    return %c0_i32, %c0_i32_0 : i32, i32
  }
  func.func @transform_3(%arg0: i32) -> (i32, i32) {
    %c0_i32 = arith.constant 0 : i32
    %c0_i32_0 = arith.constant 0 : i32
    return %arg0, %c0_i32 : i32, i32
  }
}

</mosaic_0001>

<bundles_post_ra>
// kernel: tpu_custom_call.1
= control target key start
LH: loop header
LB: loop body
LE: loop exit
PB: predicated region body
PF: predicated region fallthrough
CT: control target
= control target key end

     0   :  { %8 = vsyncpa [#allocation3], 0  ;;  %s848_s0 = inlined_call_operand.vmem [shape: f32[16,32], index: 0, kind: input, shape index: {}]   ;;  %s849_s1 = inlined_call_operand.vmem [shape: f32[128,32], index: 1, kind: input, shape index: {}]   ;;  %s850_s2 = inlined_call_operand.vmem [shape: f32[3,128], index: 2, kind: input, shape index: {}]   ;;  %s851_s3 = inlined_call_operand.hbm [shape: f32[16,128], index: 3, kind: output, shape index: {}]  }
   0x1   :  { %10 = vsyncpa [#allocation3 + $0x1], 0  ;;  %s668_s12 = smov 0   ;;  %s670_s13 = smov 0  }
   0x2   :  { %s672_s14 = smov 0   ;;  %s674_s15 = smov 0  }
   0x3 LB: > { %s689_s16 = sadd.s32 4294967295, %s642_s15   ;;  %s420_s17 = sadd.s32 4294967294, %s642_s15   ;;  %s642_s15 = sphi %s674_s15, %s859_s15   ;;  %s638_s14 = sphi %s672_s14, %s858_s14   ;;  %s634_s13 = sphi %s670_s13, %s857_s13   ;;  %s630_s12 = sphi %s668_s12, %s856_s12  }
   0x4   : > { %s693_s18 = sadd.s32 1, %s642_s15   ;;  %s91_s19 = sadd.s32 1, %s638_s14 }
   0x5   : > { %s88_s20 = ssub.s32 %s642_s15, %s693_s18  ;;  %p101_p0 = scmp.ne.s32.totalorder %s638_s14, %s634_s13 }
   0x6   : > { %p89_p1 = scmp.eq.s32.totalorder %s88_s20, 0  ;;  %p102_p2 = scmp.eq.s32.totalorder %s689_s16, 1 }
   0x7   : > { %p107_p3 = scmp.ne.s32.totalorder %s634_s13, %s630_s12  ;;  %p108_p4 = scmp.eq.s32.totalorder %s420_s17, 1 }
   0x8   : > { %s704_s21 = scalar_select %p89_p1, %s638_s14, %s91_s19  }
   0x9   : > { %p706_p5 = por %p102_p2, %p101_p0  ;;  %p710_p6 = por %p108_p4, %p107_p3 }
   0xa   : > { %p423_p7 = scmp.ge.s32.totalorder %s642_s15, 1  ;;  %p139_p8 = scmp.lt.s32.totalorder %s642_s15, 3 }
   0xc   : > { %p140_p9 = pnand %p423_p7, %p139_p8 }
   0xd   : > { %v167_v0 = vld [vmem:[%s849_s1] sm:$0xff] (!%p140_p9)  ;;  %v168_v1 = vld [vmem:[%s849_s1 + $0x8] sm:$0xff] (!%p140_p9)  ;;  %vm188_vm0 = vcmask (!%p140_p9), 261120   ;;  %v644_v2 = vmov (!%p140_p9), 0.0|0.0   ;;  %vm645_vm2 = vmmov (!%p140_p9), 0   ;;  %v646_v5 = vmov (!%p140_p9), 0.0  }
   0xe   : > { %143 = sbr.rel (%p140_p9) target bundleno = 639 (0x27f), region = 32  ;;  %502 = vmatprep.subr.bf16.mxu0 (!%p140_p9), %v644_v2  ;;  %v503_v3 = vpack.c.bf16 (!%p140_p9), %v168_v1, %v167_v0  ;;  %vm724_vm1 = vmpackc.low (!%p140_p9), %vm188_vm0, %vm188_vm0  ;;  %499 = vmatprep.mubr.msk.f32.mxu0 (!%p140_p9), %vm645_vm2, %v646_v5  ;;  %v169_v6 = vld [vmem:[%s849_s1 + $0x10] sm:$0xff] (!%p140_p9)  ;;  %v170_v7 = vld [vmem:[%s849_s1 + $0x18] sm:$0xff] (!%p140_p9)  ;;  %p162_p10 = scmp.lt.s32.totalorder (!%p140_p9), %s689_s16, 1 }
   0xf   : > { %v507_v8 = vpack.c.bf16 (!%p140_p9), %v170_v7, %v169_v6  ;;  %v171_v9 = vld [vmem:[%s849_s1 + $0x20] sm:$0xff] (!%p140_p9)  ;;  %v172_v10 = vld [vmem:[%s849_s1 + $0x28] sm:$0xff] (!%p140_p9)  ;;  %v173_v12 = vld [vmem:[%s849_s1 + $0x30] sm:$0xff] (!%p140_p9)  ;;  %s159_s27 = sand.u32 (!%p140_p9), 1, %s634_s13   ;;  %s447_s6 = sshll.u32 (!%p140_p9), %s689_s16, 7 }
  0x10   : > { %505 = vmatpush3.bf16.xpose.msk.msra.mxu0 (!%p140_p9), %vm724_vm1, %v503_v3  ;;  %v511_v11 = vpack.c.bf16 (!%p140_p9), %v172_v10, %v171_v9  ;;  %v174_v13 = vld [vmem:[%s849_s1 + $0x38] sm:$0xff] (!%p140_p9)  ;;  %v175_v15 = vld [vmem:[%s849_s1 + $0x40] sm:$0xff] (!%p140_p9)  ;;  %v176_v16 = vld [vmem:[%s849_s1 + $0x48] sm:$0xff] (!%p140_p9)  ;;  %s424_s28 = sshll.u32 (!%p140_p9), %s159_s27, 3 }
  0x11   : > { %506 = vmatprep.subr.bf16.mxu0 (!%p140_p9), %v644_v2  ;;  %v515_v14 = vpack.c.bf16 (!%p140_p9), %v174_v13, %v173_v12  ;;  %v519_v17 = vpack.c.bf16 (!%p140_p9), %v176_v16, %v175_v15  ;;  %v177_v18 = vld [vmem:[%s849_s1 + $0x50] sm:$0xff] (!%p140_p9)  ;;  %v178_v19 = vld [vmem:[%s849_s1 + $0x58] sm:$0xff] (!%p140_p9)  ;;  %v179_v21 = vld [vmem:[%s849_s1 + $0x60] sm:$0xff] (!%p140_p9)  ;;  %s161_s7 = scalar_lea.vmem (!%p140_p9), [#allocation2], %s424_s28 }
  0x12   : > { %v523_v20 = vpack.c.bf16 (!%p140_p9), %v178_v19, %v177_v18  ;;  %v180_v22 = vld [vmem:[%s849_s1 + $0x68] sm:$0xff] (!%p140_p9)  ;;  %v181_v24 = vld [vmem:[%s849_s1 + $0x70] sm:$0xff] (!%p140_p9)  ;;  %v182_v25 = vld [vmem:[%s849_s1 + $0x78] sm:$0xff] (!%p140_p9)  ;;  %s361_s8 = sshll.u32 (!%p140_p9), %s161_s7, 4  ;;  %s808_s8 = int_to_ptr.vmem [resolvable:$true] %s361_s8 }
  0x13   : > { %v527_v23 = vpack.c.bf16 (!%p140_p9), %v180_v22, %v179_v21  ;;  %v531_v26 = vpack.c.bf16 (!%p140_p9), %v182_v25, %v181_v24  ;;  %v426_v28 = vld [vmem:[%s850_s2] ss:$0 sm:$0xff] (!%p140_p9)  ;;  %v444_v49 = vld [vmem:[%s850_s2 + $0x1] ss:$0 sm:$0xff] (!%p140_p9)  ;;  %v445_v53 = vld [vmem:[%s850_s2 + $0x2] ss:$0 sm:$0xff] (!%p140_p9) }
  0x14   : > { %s580_s19 = scalar_lea.vmem (!%p140_p9), %s808_s8, 128 }
  0x15   : > { %s163_s11 = scalar_select %p162_p10, %s689_s16, 1 }
  0x16   : > { %p581_p11 = scmp.ne.s32.totalorder %s808_s8, %s580_s19  ;;  %s647_s16 = smov [#allocation2]  }
  0x17   : > { %s425_s17 = sshll.u32 %s163_s11, 3  ;;  %s806_s11 = scalar_lea.hbm %s851_s3, %s447_s6 }
  0x18   : > { %509 = vmatpush3.bf16.xpose.msk.msra.mxu0 %vm724_vm1, %v507_v8  ;;  %s165_s24 = scalar_lea.vmem %s848_s0, %s425_s17  ;;  %s348_s17 = scalar_lea.sflag [#allocation3], %s159_s27 }
  0x19   : > { %510 = vmatprep.subr.bf16.mxu0 %v644_v2  ;;  %v166_v27 = vld [vmem:[%s165_s24] sm:$0xff]  ;;  %p582_p12 = pnand %p581_p11, %p706_p5  ;;  %s584_s20 = sshll.u32 %s647_s16, 4  ;;  %s585_s20 = int_to_ptr.vmem [resolvable:$false] %s584_s20 }
  0x1a   : > { %s586_s24 = scalar_lea.vmem %s585_s20, 256  ;;  %p587_p0 = scmp.lt.s32.totalorder %s808_s8, %s585_s20 }
  0x1b   : > { %p583_p13 = pneg %p582_p12  ;;  %p588_p1 = scmp.lt.s32.totalorder %s586_s24, %s580_s19 }
  0x1d   : > { %p589_p2 = por %p588_p1, %p587_p0 }
  0x1f   : > { %p590_p3 = pnand %p589_p2, %p583_p13 }
  0x20   : > { %513 = vmatpush3.bf16.xpose.msk.msra.mxu0 %vm724_vm1, %v511_v11 }
  0x21   : > { %514 = vmatprep.subr.bf16.mxu0 %v644_v2 }
  0x28   : > { %517 = vmatpush3.bf16.xpose.msk.msra.mxu0 %vm724_vm1, %v515_v14 }
  0x29   : > { %518 = vmatprep.subr.bf16.mxu0 %v644_v2 }
  0x30   : > { %521 = vmatpush3.bf16.xpose.msk.msra.mxu0 %vm724_vm1, %v519_v17 }
  0x31   : > { %522 = vmatprep.subr.bf16.mxu0 %v644_v2 }
  0x38   : > { %525 = vmatpush3.bf16.xpose.msk.msra.mxu0 %vm724_vm1, %v523_v20 }
  0x39   : > { %526 = vmatprep.subr.bf16.mxu0 %v644_v2 }
  0x40   : > { %529 = vmatpush3.bf16.xpose.msk.msra.mxu0 %vm724_vm1, %v527_v23 }
  0x41   : > { %530 = vmatprep.subr.bf16.mxu0 %v644_v2 }
  0x48   : > { %533 = vmatpush3.bf16.xpose.msk.msra.mxu0 %vm724_vm1, %v531_v26 }
  0x4f   : > { %500 = vmatmul.mubr.msk.f32.vlgmr.msra.gmra.mrb[0].mxu0 %vm188_vm0, %v166_v27 }
 0x122   : > { %v306_v29 = vpop.f32.mrb[0].mxu0 }
 0x123   : > { %v307_v30 = vadd.f32 %v426_v28, %v306_v29  ;;  %v501_v31 = vpop.f32.mrb[1].mxu0 }
 0x125   : > { %312 = vadd.xlane.f32.xlu0 %v307_v30 }
 0x1b2   : > { %v313_v32 = vpop.xlane.xlu0 %312 }
 0x1b3   : > { %v314_v33 = vmul.f32 0.03125, %v313_v32 }
 0x1b5   : > { %v315_v34 = vsub.f32 %v307_v30, %v314_v33  ;;  %v319_v36 = vmul.f32 %v314_v33, %v314_v33 }
 0x1b7   : > { %v316_v35 = vmul.f32 %v315_v34, %v315_v34  ;;  %v320_v37 = vmul.f32 96.0, %v319_v36  ;;  %v339_v51 = vmul.f32 %v444_v49, %v315_v34 }
 0x1b9   : > { %317 = vadd.xlane.f32.xlu0 %v316_v35 }
 0x246   : > { %v318_v38 = vpop.xlane.xlu0 %317 }
 0x247   : > { %v321_v39 = vsub.f32 %v318_v38, %v320_v37 }
 0x249   : > { %v322_v40 = vmul.f32 0.032258064, %v321_v39 }
 0x24b   : > { %576 = vrsqrt.f32 %v322_v40  ;;  %vm325_vm3 = vcmp.eq.f32.partialorder %v322_v40, inf  ;;  %v328_v43 = vand.u32 2147483648, %v322_v40  ;;  %vm327_vm4 = vcmp.eq.f32.partialorder %v322_v40, 0.0 }
 0x255   : > { %v577_v41 = vpop.eup %576 }
 0x256   : > { %v324_v42 = vmul.f32 %v577_v41, %v322_v40 }
 0x258   : > { %v326_v44 = vsel %vm325_vm3, %v322_v40, %v324_v42 }
 0x259   : > { %v329_v45 = vsel %vm327_vm4, %v328_v43, %v326_v44 }
 0x25a   : > { %v330_v46 = vadd.f32 1e-06, %v329_v45 }
 0x25c   : > { %578 = vrcp.f32 %v330_v46 }
 0x266   : > { %v579_v47 = vpop.eup %578 }
 0x267   : > { %v332_v48 = vmul.f32 %v579_v47, %v330_v46 }
 0x269   : > { %v333_v50 = vsub.f32 2.0, %v332_v48 }
 0x26b   : > { %v334_v52 = vmul.f32 %v579_v47, %v333_v50 }
 0x26d   : > { %v340_v54 = vmul.f32 %v339_v51, %v334_v52 }
 0x26f   : > { %v345_v55 = vadd.f32 %v445_v53, %v340_v54 }
 0x271   : > { %346 = vst [vmem:[%s161_s7] sm:$0xff] %v345_v55 }
 0x272   : > { %593 = shalt.err (!%p590_p3)
}
 0x273   : > { %s594_s25 = scalar_lea.hbm %s806_s11, 128  ;;  %s598_s28 = scalar_lea.hbm %s851_s3, 256 }
 0x274   : > { %p595_p4 = scmp.ne.s32.totalorder %s806_s11, %s594_s25  ;;  %p599_p9 = scmp.lt.u32.totalorder %s806_s11, %s851_s3 }
 0x275   : > { %p600_p10 = scmp.lt.u32.totalorder %s598_s28, %s594_s25  ;;  %p602_p12 = scmp.lt.u32.totalorder %s594_s25, %s806_s11 }
 0x276   : > { %p596_p7 = pnand %p595_p4, %p706_p5 }
 0x277   : > { %p601_p11 = por %p600_p10, %p599_p9 }
 0x278   : > { %p597_p8 = pneg %p596_p7 }
 0x279   : > { %p603_p13 = por %p602_p12, %p601_p11 }
 0x27b   : > { %p604_p0 = pnand %p603_p13, %p597_p8 }
 0x27d   : > { %607 = shalt.err (!%p604_p0)
}
 0x27e   : > { %534 = dma.vmem_to_hbm [thread:$0]  (%p706_p5), %s808_s8, 128, %s806_s11, %s348_s17  }
 0x27f PF: > { %p540_p1 = scmp.ge.s32.totalorder %s642_s15, 2  ;;  %s373_s4 = sand.u32 1, %s630_s12  }
 0x280   : > { %s374_s5 = scalar_lea.sflag [#allocation3], %s373_s4 }
 0x281   : > { %p537_p2 = pnand %p540_p1, %p710_p6 }
 0x283   : > { %625 = dma.done.wait (!%p537_p2), %s374_s5, 128  }
 0x284   : > { %627 = vsyncadd (!%p537_p2), %s374_s5, 4294967168  ;;  %p13_p3 = scmp.ge.s32.totalorder %s693_s18, 4   ;;  %s856_s12 = smov %s634_s13 }
 0x285   : > { %s857_s13 = smov %s638_s14  ;;  %s858_s14 = smov %s704_s21 }
 0x286   : > { %s859_s15 = smov %s693_s18  ;;  %15 = sbr.rel (!%p13_p3) target bundleno = 3 (0x3), region = 67 }
 0x28d   :  { %379 = vsyncpa [#allocation3], 1 }
 0x28e   :  { %381 = vsyncpa [#allocation3 + $0x1], 1 }

</bundles_post_ra>
